<compile_context>
chip_gen: v6e
topology: v6e:2x2x1
jax: 0.10.0
libtpu: 0.0.40
codegen_flags: <defaults>
</compile_context>

<pallas_src>
import jax
import jax.numpy as jnp
from jax.experimental import pallas as pl
from jax.experimental.pallas import tpu as pltpu


def _round_up(x, m):
    return (x + m - 1) // m * m


def _pad2d(x, rows, cols):
    r, c = x.shape
    return jnp.pad(x, ((0, rows - r), (0, cols - c)))


def _make_fused_gcn_kernel(num_layers, dout_pads):
    """Kernel computing `num_layers` fused SAGEConv('mean') + ReLU layers."""

    def kernel(a_ref, inv_deg_ref, h_ref, *rest):
        # rest = (w_cat_0, b_0, w_cat_1, b_1, ..., o_ref)
        o_ref = rest[-1]
        a = a_ref[...]              # [Np, Np]  bf16 {0,1} adjacency (exact)
        inv_deg = inv_deg_ref[...]  # [Np, 1]   f32 1/in_degree (0 if deg==0)
        x = h_ref[...]              # [Np, D0p] bf16 node features
        y = None
        for li in range(num_layers):
            w = rest[2 * li][...]        # [Dinp, 2*Doutp] bf16 = [W_self | W_neigh]
            b = rest[2 * li + 1][...]    # [1, Doutp] f32
            dpad = dout_pads[li]
            # merged projection: one wide MXU matmul covers self + neighbor weights
            proj = jnp.dot(x, w, preferred_element_type=jnp.float32)
            h_self = proj[:, :dpad]
            h_nb = proj[:, dpad:].astype(jnp.bfloat16)
            # neighbor SUM on the MXU with the exact {0,1} adjacency, then the
            # mean normalization as an f32 per-row multiply on the VPU.
            agg = jnp.dot(a, h_nb, preferred_element_type=jnp.float32) * inv_deg
            y = jnp.maximum(h_self + agg + b, 0.0)   # f32 bias + ReLU
            x = y.astype(jnp.bfloat16)               # MXU input of next layer
        o_ref[...] = y

    return kernel


def prepare_gcn_operands(adj01, h, params):
    """Pad + cast all operands once (hoisted out of the per-forward path)."""
    num_layers = len(params)
    n = h.shape[0]
    np_ = _round_up(n, 128)

    din = [w_self.shape[0] for (w_self, _, _) in params]
    dout = [w_self.shape[1] for (w_self, _, _) in params]
    din_p = [_round_up(d, 128) for d in din]
    dout_p = [_round_up(d, 128) for d in dout]

    adj01 = adj01.astype(jnp.float32)
    in_deg = jnp.sum(adj01, axis=1, keepdims=True)
    inv_deg = jnp.where(in_deg > 0, 1.0 / jnp.maximum(in_deg, 1.0), 0.0)

    a_p = _pad2d(adj01, np_, np_).astype(jnp.bfloat16)          # exact {0,1} in bf16
    inv_deg_p = _pad2d(inv_deg, np_, 1).astype(jnp.float32)
    h_p = _pad2d(h, np_, din_p[0]).astype(jnp.bfloat16)

    layer_ops = []
    for li, (w_self, w_neigh, bias) in enumerate(params):
        w_cat = jnp.concatenate(
            [_pad2d(w_self, din_p[li], dout_p[li]),
             _pad2d(w_neigh, din_p[li], dout_p[li])],
            axis=1,
        ).astype(jnp.bfloat16)                                  # [Dinp, 2*Doutp]
        b_p = _pad2d(bias.reshape(1, -1), 1, dout_p[li]).astype(jnp.float32)
        layer_ops += [w_cat, b_p]

    operands = (a_p, inv_deg_p, h_p, tuple(layer_ops))
    meta = dict(num_layers=num_layers, n=n, np_=np_,
                din_p=tuple(din_p), dout_p=tuple(dout_p), dout_last=dout[-1])
    return operands, meta


def gcn_forward_padded(operands, meta):
    """Fused multi-layer SAGEConv('mean') + ReLU forward in one pallas_call."""
    a_p, inv_deg_p, h_p, layer_ops = operands
    num_layers = meta["num_layers"]
    np_ = meta["np_"]
    din_p = meta["din_p"]
    dout_p = meta["dout_p"]

    all_ops = (a_p, inv_deg_p, h_p) + tuple(layer_ops)

    # Generation-aware VMEM budget. Operands are single-buffered (no grid).
    try:
        vmem_cap = int(getattr(pltpu.get_tpu_info(), "vmem_capacity_bytes",
                               64 << 20))
    except Exception:  # pragma: no cover - conservative fallback
        vmem_cap = 64 << 20
    operand_bytes = int(sum(int(x.size) * x.dtype.itemsize for x in all_ops))
    out_bytes = int(np_ * dout_p[-1] * 4)
    # per layer live temporaries: proj f32 (8B/elem over Doutp) + h_nb bf16 +
    # agg f32 + y f32 + x bf16  ~= 20 bytes per (node, out-feature)
    inter_bytes = int(sum(np_ * dp * 20 for dp in dout_p))
    vmem_needed = operand_bytes + out_bytes + inter_bytes
    budget = int(0.70 * vmem_cap)
    assert vmem_needed < budget, (
        f"graph too large for fused all-in-VMEM GCN kernel "
        f"({vmem_needed} B needed, budget {budget} B)")
    vmem_limit = int(min(max(vmem_needed + (8 << 20), 32 << 20),
                         int(0.85 * vmem_cap)))

    flops = 0
    for li in range(num_layers):
        flops += 2 * np_ * din_p[li] * (2 * dout_p[li])   # merged projection matmul
        flops += 2 * np_ * np_ * dout_p[li]               # aggregation matmul
    cost = pl.CostEstimate(flops=int(flops), transcendentals=0,
                           bytes_accessed=operand_bytes + out_bytes)

    vmem_spec = pl.BlockSpec(memory_space=pltpu.MemorySpace.VMEM)
    kernel = _make_fused_gcn_kernel(num_layers, dout_p)
    out_p = pl.pallas_call(
        kernel,
        out_shape=jax.ShapeDtypeStruct((np_, dout_p[-1]), jnp.float32),
        in_specs=[vmem_spec] * len(all_ops),
        out_specs=vmem_spec,
        compiler_params=pltpu.CompilerParams(vmem_limit_bytes=vmem_limit),
        cost_estimate=cost,
    )(*all_ops)

    return out_p[: meta["n"], : meta["dout_last"]]


def gcn_forward(adj01, h, params):
    operands, meta = prepare_gcn_operands(adj01, h, params)
    return gcn_forward_padded(operands, meta)


def init_gcn_params(key, in_size, out_size, num_layers=2):
    """Xavier-uniform-ish init matching DGL SAGEConv layer shapes."""
    dims = [in_size] + [out_size * 2] * (num_layers - 1) + [out_size]
    params = []
    for li in range(num_layers):
        din, dout = dims[li], dims[li + 1]
        key, k1, k2, k3 = jax.random.split(key, 4)
        limit = jnp.sqrt(6.0 / (din + dout))
        w_self = jax.random.uniform(k1, (din, dout), jnp.float32, -limit, limit)
        w_neigh = jax.random.uniform(k2, (din, dout), jnp.float32, -limit, limit)
        bias = jax.random.uniform(k3, (dout,), jnp.float32, -0.1, 0.1)
        params.append((w_self, w_neigh, bias))
    return params


def build_adjacency(key, num_nodes, edge_prob=0.2):
    """Dense random graph; A[i, j] = 1 if edge j->i else 0 (no self loops)."""
    adj = jax.random.bernoulli(key, p=edge_prob, shape=(num_nodes, num_nodes))
    adj = adj.astype(jnp.float32)
    adj = adj * (1.0 - jnp.eye(num_nodes, dtype=jnp.float32))
    return adj


def _reference_forward(adj01, h, params):
    """Plain-JAX reference with the same bf16-MXU / f32-normalize numerics."""
    adj01 = adj01.astype(jnp.float32)
    in_deg = jnp.sum(adj01, axis=1, keepdims=True)
    inv_deg = jnp.where(in_deg > 0, 1.0 / jnp.maximum(in_deg, 1.0), 0.0)
    a_b = adj01.astype(jnp.bfloat16)
    x_b = h.astype(jnp.bfloat16)
    y = None
    for (w_self, w_neigh, bias) in params:
        self_t = jnp.dot(x_b, w_self.astype(jnp.bfloat16),
                         preferred_element_type=jnp.float32)
        nb_t = jnp.dot(x_b, w_neigh.astype(jnp.bfloat16),
                       preferred_element_type=jnp.float32)
        agg = jnp.dot(a_b, nb_t.astype(jnp.bfloat16),
                      preferred_element_type=jnp.float32) * inv_deg
        y = jnp.maximum(self_t + agg + bias.reshape(1, -1), 0.0)
        x_b = y.astype(jnp.bfloat16)
    return y


if __name__ == "__main__":
    key = jax.random.PRNGKey(0)
    k_graph, k_feat, k_param = jax.random.split(key, 3)

    num_nodes = 64
    in_size = 32
    out_size = 16
    num_layers = 2

    adj01 = build_adjacency(k_graph, num_nodes)
    h = jax.random.normal(k_feat, (num_nodes, in_size), dtype=jnp.float32)
    params = init_gcn_params(k_param, in_size, out_size, num_layers)

    # Operand preparation (pad + bf16 cast) hoisted out of the per-call path.
    operands, meta = prepare_gcn_operands(adj01, h, params)
    out = gcn_forward_padded(operands, meta)
    out = jax.block_until_ready(out)

    assert out.shape == (num_nodes, out_size), out.shape
    assert out.dtype == jnp.float32

    ref = _reference_forward(adj01, h, params)
    max_err = float(jnp.max(jnp.abs(out - ref)))
    assert jnp.allclose(out, ref, atol=2e-2, rtol=2e-2), max_err

    print("KERNEL_OK")
</pallas_src>

<mosaic_0001>
module attributes {stable_mosaic.version = 11 : i64} {
  func.func @kernel(%arg0: memref<128x128xbf16, #tpu.memory_space<vmem>>, %arg1: memref<128x1xf32, #tpu.memory_space<vmem>>, %arg2: memref<128x128xbf16, #tpu.memory_space<vmem>>, %arg3: memref<128x256xbf16, #tpu.memory_space<vmem>>, %arg4: memref<1x128xf32, #tpu.memory_space<vmem>>, %arg5: memref<128x256xbf16, #tpu.memory_space<vmem>>, %arg6: memref<1x128xf32, #tpu.memory_space<vmem>>, %arg7: memref<128x128xf32, #tpu.memory_space<vmem>>) attributes {dimension_semantics = [], scalar_prefetch = 0 : i64, scratch_operands = 0 : i64, tpu.core_type = #tpu.core_type<tc>} {
    %c0 = arith.constant 0 : index
    %c0_0 = arith.constant 0 : index
    %0 = vector.load %arg0[%c0, %c0_0] : memref<128x128xbf16, #tpu.memory_space<vmem>>, vector<128x128xbf16>
    %c0_1 = arith.constant 0 : index
    %c0_2 = arith.constant 0 : index
    %1 = vector.load %arg1[%c0_1, %c0_2] : memref<128x1xf32, #tpu.memory_space<vmem>>, vector<128x1xf32>
    %c0_3 = arith.constant 0 : index
    %c0_4 = arith.constant 0 : index
    %2 = vector.load %arg2[%c0_3, %c0_4] : memref<128x128xbf16, #tpu.memory_space<vmem>>, vector<128x128xbf16>
    %c0_5 = arith.constant 0 : index
    %c0_6 = arith.constant 0 : index
    %3 = vector.load %arg3[%c0_5, %c0_6] : memref<128x256xbf16, #tpu.memory_space<vmem>>, vector<128x256xbf16>
    %c0_7 = arith.constant 0 : index
    %c0_8 = arith.constant 0 : index
    %4 = vector.load %arg4[%c0_7, %c0_8] : memref<1x128xf32, #tpu.memory_space<vmem>>, vector<1x128xf32>
    %cst = arith.constant dense<0.000000e+00> : vector<128x256xf32>
    %5 = tpu.matmul %2, %3, %cst {dimension_numbers = #tpu.dot_dimension_numbers<[1], [0], [0], [1], [0, 0, 1, 1], [], []>} : vector<128x128xbf16>, vector<128x256xbf16>, vector<128x256xf32> -> vector<128x256xf32>
    %6 = vector.extract_strided_slice %5 {offsets = [0, 0], sizes = [128, 128], strides = [1, 1]} : vector<128x256xf32> to vector<128x128xf32>
    %7 = vector.extract_strided_slice %5 {offsets = [0, 128], sizes = [128, 128], strides = [1, 1]} : vector<128x256xf32> to vector<128x128xf32>
    %8 = arith.truncf %7 : vector<128x128xf32> to vector<128x128xbf16>
    %cst_9 = arith.constant dense<0.000000e+00> : vector<128x128xf32>
    %9 = tpu.matmul %0, %8, %cst_9 {dimension_numbers = #tpu.dot_dimension_numbers<[1], [0], [0], [1], [0, 0, 1, 1], [], []>} : vector<128x128xbf16>, vector<128x128xbf16>, vector<128x128xf32> -> vector<128x128xf32>
    %10 = vector.broadcast %1 : vector<128x1xf32> to vector<128x128xf32>
    %11 = arith.mulf %9, %10 : vector<128x128xf32>
    %12 = arith.addf %6, %11 : vector<128x128xf32>
    %13 = vector.broadcast %4 : vector<1x128xf32> to vector<128x128xf32>
    %14 = arith.addf %12, %13 : vector<128x128xf32>
    %cst_10 = arith.constant 0.000000e+00 : f32
    %15 = vector.broadcast %cst_10 : f32 to vector<128x128xf32>
    %16 = arith.maximumf %14, %15 : vector<128x128xf32>
    %17 = arith.truncf %16 : vector<128x128xf32> to vector<128x128xbf16>
    %c0_11 = arith.constant 0 : index
    %c0_12 = arith.constant 0 : index
    %18 = vector.load %arg5[%c0_11, %c0_12] : memref<128x256xbf16, #tpu.memory_space<vmem>>, vector<128x256xbf16>
    %c0_13 = arith.constant 0 : index
    %c0_14 = arith.constant 0 : index
    %19 = vector.load %arg6[%c0_13, %c0_14] : memref<1x128xf32, #tpu.memory_space<vmem>>, vector<1x128xf32>
    %cst_15 = arith.constant dense<0.000000e+00> : vector<128x256xf32>
    %20 = tpu.matmul %17, %18, %cst_15 {dimension_numbers = #tpu.dot_dimension_numbers<[1], [0], [0], [1], [0, 0, 1, 1], [], []>} : vector<128x128xbf16>, vector<128x256xbf16>, vector<128x256xf32> -> vector<128x256xf32>
    %21 = vector.extract_strided_slice %20 {offsets = [0, 0], sizes = [128, 128], strides = [1, 1]} : vector<128x256xf32> to vector<128x128xf32>
    %22 = vector.extract_strided_slice %20 {offsets = [0, 128], sizes = [128, 128], strides = [1, 1]} : vector<128x256xf32> to vector<128x128xf32>
    %23 = arith.truncf %22 : vector<128x128xf32> to vector<128x128xbf16>
    %cst_16 = arith.constant dense<0.000000e+00> : vector<128x128xf32>
    %24 = tpu.matmul %0, %23, %cst_16 {dimension_numbers = #tpu.dot_dimension_numbers<[1], [0], [0], [1], [0, 0, 1, 1], [], []>} : vector<128x128xbf16>, vector<128x128xbf16>, vector<128x128xf32> -> vector<128x128xf32>
    %25 = vector.broadcast %1 : vector<128x1xf32> to vector<128x128xf32>
    %26 = arith.mulf %24, %25 : vector<128x128xf32>
    %27 = arith.addf %21, %26 : vector<128x128xf32>
    %28 = vector.broadcast %19 : vector<1x128xf32> to vector<128x128xf32>
    %29 = arith.addf %27, %28 : vector<128x128xf32>
    %cst_17 = arith.constant 0.000000e+00 : f32
    %30 = vector.broadcast %cst_17 : f32 to vector<128x128xf32>
    %31 = arith.maximumf %29, %30 : vector<128x128xf32>
    %c0_18 = arith.constant 0 : index
    %c0_19 = arith.constant 0 : index
    %32 = vector.load %arg7[%c0_18, %c0_19] : memref<128x128xf32, #tpu.memory_space<vmem>>, vector<128x128xf32>
    tpu.vector_store %arg7[%c0_18, %c0_19], %31 {strides = array<i32>} : memref<128x128xf32, #tpu.memory_space<vmem>>, vector<128x128xf32>,
    return
  }
}

</mosaic_0001>

<bundles_post_ra>
// kernel: tpu_custom_call.1
= control target key start
LH: loop header
LB: loop body
LE: loop exit
PB: predicated region body
PF: predicated region fallthrough
CT: control target
= control target key end

     0   :  { %12 = vsyncpa [#allocation3], 0  ;;  %s1824_s0 = inlined_call_operand.hbm [shape: bf16[128,128], index: 0, kind: input, shape index: {}]   ;;  %s1825_s1 = inlined_call_operand.vmem [shape: f32[128,1], index: 1, kind: input, shape index: {}]   ;;  %s1826_s2 = inlined_call_operand.hbm [shape: bf16[128,128], index: 2, kind: input, shape index: {}]   ;;  %s1827_s3 = inlined_call_operand.vmem [shape: bf16[128,256], index: 3, kind: input, shape index: {}]   ;;  %s1828_s4 = inlined_call_operand.vmem [shape: f32[1,128], index: 4, kind: input, shape index: {}]   ;;  %s1829_s5 = inlined_call_operand.hbm [shape: bf16[128,256], index: 5, kind: input, shape index: {}]   ;;  %s1830_s6 = inlined_call_operand.vmem [shape: f32[1,128], index: 6, kind: input, shape index: {}]   ;;  %s1831_s7 = inlined_call_operand.hbm [shape: f32[128,128], index: 7, kind: output, shape index: {}]  }
   0x1   :  { %13 = vsyncpa [#allocation6], 0 }
   0x2   :  { %14 = vsyncpa [#allocation4], 0  ;;  %s1412_s24 = smov [#allocation5]   ;;  %s1413_s26 = smov [#allocation2]  }
   0x3   :  { %s34_s25 = sshll.u32 %s1412_s24, 4  ;;  %s20_s27 = sshll.u32 %s1413_s26, 4  ;;  %s35_s25 = int_to_ptr.vmem [resolvable:$true] %s34_s25  ;;  %s21_s27 = int_to_ptr.vmem [resolvable:$true] %s20_s27 }
   0x4   :  { %s1334_s28 = scalar_lea.vmem %s35_s25, 1024  ;;  %p1339_p1 = scmp.lt.s32.totalorder %s35_s25, %s35_s25 }
   0x5   :  { %p1335_p0 = scmp.ne.s32.totalorder %s35_s25, %s1334_s28  ;;  %p1340_p2 = scmp.lt.s32.totalorder %s1334_s28, %s1334_s28 }
   0x7   :  { %p1341_p3 = por %p1340_p2, %p1339_p1 }
   0x9   :  { %p1342_p4 = pnand %p1341_p3, %p1335_p0 }
   0xb   :  { %1345 = shalt.err (!%p1342_p4)
}
   0xc   :  { %s1414_s29 = smov 64   ;;  %s1415_s30 = smov 4  }
   0xd   :  { %40 = dma.hbm_to_vmem [thread:$0]  %s1826_s2, 1024, %s35_s25, [#allocation6], %s1414_s29, %s1414_s29, %s1415_s30  }
   0xe   :  { %s1354_s10 = scalar_lea.vmem %s21_s27, 1024  ;;  %p1359_p6 = scmp.lt.s32.totalorder %s21_s27, %s21_s27 }
   0xf   :  { %p1355_p5 = scmp.ne.s32.totalorder %s21_s27, %s1354_s10  ;;  %p1360_p7 = scmp.lt.s32.totalorder %s1354_s10, %s1354_s10 }
  0x11   :  { %p1361_p8 = por %p1360_p7, %p1359_p6 }
  0x13   :  { %p1362_p9 = pnand %p1361_p8, %p1355_p5 }
  0x15   :  { %1365 = shalt.err (!%p1362_p9)
}
  0x16   :  { %26 = dma.hbm_to_vmem [thread:$0]  %s1824_s0, 1024, %s21_s27, [#allocation3], %s1414_s29, %s1414_s29, %s1415_s30  }
  0x17   :  { %s1416_s13 = smov [#allocation7]  }
  0x18   :  { %s50_s14 = sshll.u32 %s1416_s13, 4  ;;  %s51_s14 = int_to_ptr.vmem [resolvable:$true] %s50_s14 }
  0x19   :  { %s1374_s15 = scalar_lea.vmem %s51_s14, 2048  ;;  %p1379_p11 = scmp.lt.s32.totalorder %s51_s14, %s51_s14 }
  0x1a   :  { %p1375_p10 = scmp.ne.s32.totalorder %s51_s14, %s1374_s15  ;;  %p1380_p12 = scmp.lt.s32.totalorder %s1374_s15, %s1374_s15 }
  0x1c   :  { %p1381_p13 = por %p1380_p12, %p1379_p11 }
  0x1e   :  { %p1382_p0 = pnand %p1381_p13, %p1375_p10 }
  0x20   :  { %1385 = shalt.err (!%p1382_p0)
}
  0x21   :  { %s1417_s2 = smov 128   ;;  %s1418_s16 = smov 8  }
  0x22   :  { %56 = dma.hbm_to_vmem [thread:$0]  %s1829_s5, 2048, %s51_s14, [#allocation6], %s1417_s2, %s1417_s2, %s1418_s16  }
  0x23   :  { %1406 = dma.done.wait [#allocation3], 1024  }
  0x24   :  { %1407 = vsyncadd [#allocation3], 4294966272 }
  0x25   :  { %1408 = dma.done.wait [#allocation6], 3072  }
  0x26   :  { %1409 = vsyncadd [#allocation6], 4294964224  ;;  %v1419_v0 = vmov 0   ;;  %v1262_v1 = vld [vmem:[%s1827_s3 + $0x74] ss:$8 sps:$4 sm:$0xff]   ;;  %v1286_v17 = vld [vmem:[#allocation5] sm:$0xff]  }
  0x27   :  { %294 = vmatprep.mubr.bf16.mxu0 %v1419_v0  ;;  %1260 = vset.pattern.permute.xlu0 %v1419_v0  ;;  %v1264_v2 = vld [vmem:[%s1827_s3 + $0x70] ss:$8 sps:$4 sm:$0xff]   ;;  %v1265_v3 = vld [vmem:[%s1827_s3 + $0x64] ss:$8 sps:$4 sm:$0xff]   ;;  %v1267_v4 = vld [vmem:[%s1827_s3 + $0x60] ss:$8 sps:$4 sm:$0xff]  }
  0x28   :  { %1261 = vset.pattern.permute.xlu1 %v1419_v0  ;;  %262 = vmatprep.subr.bf16.mxu0 %v1262_v1  ;;  %v1268_v5 = vld [vmem:[%s1827_s3 + $0x54] ss:$8 sps:$4 sm:$0xff]   ;;  %v1270_v6 = vld [vmem:[%s1827_s3 + $0x50] ss:$8 sps:$4 sm:$0xff]   ;;  %v1271_v7 = vld [vmem:[%s1827_s3 + $0x44] ss:$8 sps:$4 sm:$0xff]  }
  0x29   :  { %263 = vmatpush1.bf16.msra.mxu0 %v1264_v2  ;;  %v1273_v8 = vld [vmem:[%s1827_s3 + $0x40] ss:$8 sps:$4 sm:$0xff]   ;;  %v1274_v9 = vld [vmem:[%s1827_s3 + $0x34] ss:$8 sps:$4 sm:$0xff]   ;;  %v1276_v10 = vld [vmem:[%s1827_s3 + $0x30] ss:$8 sps:$4 sm:$0xff]  }
  0x2a   :  { %264 = vmatprep.subr.bf16.mxu0 %v1265_v3  ;;  %v1277_v11 = vld [vmem:[%s1827_s3 + $0x24] ss:$8 sps:$4 sm:$0xff]   ;;  %v1279_v12 = vld [vmem:[%s1827_s3 + $0x20] ss:$8 sps:$4 sm:$0xff]   ;;  %v1280_v13 = vld [vmem:[%s1827_s3 + $0x14] ss:$8 sps:$4 sm:$0xff]  }
  0x2b   :  { %v1282_v14 = vld [vmem:[%s1827_s3 + $0x10] ss:$8 sps:$4 sm:$0xff]   ;;  %v1283_v15 = vld [vmem:[%s1827_s3 + $0x4] ss:$8 sps:$4 sm:$0xff]   ;;  %v1285_v16 = vld [vmem:[%s1827_s3] ss:$8 sps:$4 sm:$0xff]  }
  0x2c   :  { %v1287_v18 = vld [vmem:[#allocation5 + $0x8] sm:$0xff]   ;;  %v1288_v19 = vld [vmem:[#allocation5 + $0x10] sm:$0xff]   ;;  %v1289_v20 = vld [vmem:[#allocation5 + $0x18] sm:$0xff]  }
  0x2d   :  { %265 = vmatpush1.bf16.msra.mxu0 %v1267_v4  ;;  %v1290_v21 = vld [vmem:[#allocation5 + $0x20] sm:$0xff]   ;;  %v1291_v22 = vld [vmem:[#allocation5 + $0x28] sm:$0xff]   ;;  %v1292_v23 = vld [vmem:[#allocation5 + $0x30] sm:$0xff]  }
  0x2e   :  { %266 = vmatprep.subr.bf16.mxu0 %v1268_v5  ;;  %v1293_v24 = vld [vmem:[#allocation5 + $0x38] sm:$0xff]   ;;  %v1294_v25 = vld [vmem:[#allocation2] sm:$0xff]   ;;  %v87_v27 = vld [vmem:[%s1825_s1 + $0x10] sm:$0xff] }
  0x2f   :  { %1203 = vmatprep.mubr.bf16.mxu1 %v1294_v25  ;;  %v85_v26 = vld [vmem:[%s1825_s1] sm:$0xff]  ;;  %540 = vperm.xlu1 %1261, %v87_v27   ;;  %v86_v28 = vld [vmem:[%s1825_s1 + $0x8] sm:$0xff]  ;;  %v88_v29 = vld [vmem:[%s1825_s1 + $0x18] sm:$0xff] }
  0x30   :  { %530 = vperm.xlu0 %1260, %v85_v26   ;;  %v89_v30 = vld [vmem:[%s1825_s1 + $0x20] sm:$0xff]  ;;  %v90_v31 = vld [vmem:[%s1825_s1 + $0x28] sm:$0xff]  ;;  %v91_v34 = vld [vmem:[%s1825_s1 + $0x30] sm:$0xff] }
  0x31   :  { %267 = vmatpush1.bf16.msra.mxu0 %v1270_v6  ;;  %v92_v35 = vld [vmem:[%s1825_s1 + $0x38] sm:$0xff]  ;;  %v93_v39 = vld [vmem:[%s1825_s1 + $0x40] sm:$0xff]  ;;  %v94_v40 = vld [vmem:[%s1825_s1 + $0x48] sm:$0xff] }
  0x32   :  { %268 = vmatprep.subr.bf16.mxu0 %v1271_v7  ;;  %v95_v43 = vld [vmem:[%s1825_s1 + $0x50] sm:$0xff]  ;;  %v96_v44 = vld [vmem:[%s1825_s1 + $0x58] sm:$0xff]  ;;  %v97_v48 = vld [vmem:[%s1825_s1 + $0x60] sm:$0xff] }
  0x33   :  { %545 = vperm.xlu1 %1261, %v88_v29   ;;  %v98_v49 = vld [vmem:[%s1825_s1 + $0x68] sm:$0xff]  ;;  %v99_v52 = vld [vmem:[%s1825_s1 + $0x70] sm:$0xff]  ;;  %v100_v53 = vld [vmem:[%s1825_s1 + $0x78] sm:$0xff] }
  0x34   :  { %535 = vperm.xlu0 %1260, %v86_v28   ;;  %v1621_v26 = vld [vmem:[#allocation2 + $0x18] sm:$0xff]   ;;  %v1623_v27 = vld [vmem:[#allocation2 + $0x20] sm:$0xff]  }
  0x35   :  { %269 = vmatpush1.bf16.msra.mxu0 %v1273_v8  ;;  %v1308_v28 = vld [vmem:[#allocation7 + $0x50] ss:$8 sps:$4 sm:$0xff]   ;;  %v1313_v29 = vld [vmem:[#allocation7 + $0x44] ss:$8 sps:$4 sm:$0xff]  }
  0x36   :  { %270 = vmatprep.subr.bf16.mxu0 %v1274_v9 }
  0x37   :  { %555 = vperm.xlu1 %1261, %v90_v31   ;;  %v1627_v31 = vld [vmem:[#allocation2 + $0x28] sm:$0xff]  }
  0x38   :  { %550 = vperm.xlu0 %1260, %v89_v30   ;;  %v1311_v30 = vld [vmem:[#allocation7 + $0x40] ss:$8 sps:$4 sm:$0xff]  }
  0x39   :  { %271 = vmatpush1.bf16.msra.mxu0 %v1276_v10 }
  0x3a   :  { %272 = vmatprep.subr.bf16.mxu0 %v1277_v11 }
  0x3b   :  { %565 = vperm.xlu1 %1261, %v92_v35   ;;  %v1316_v35 = vld [vmem:[#allocation7 + $0x34] ss:$8 sps:$4 sm:$0xff]  }
  0x3c   :  { %560 = vperm.xlu0 %1260, %v91_v34   ;;  %v1633_v34 = vld [vmem:[#allocation2 + $0x38] sm:$0xff]  }
  0x3d   :  { %273 = vmatpush1.bf16.msra.mxu0 %v1279_v12 }
  0x3e   :  { %274 = vmatprep.subr.bf16.mxu0 %v1280_v13 }
  0x3f   :  { %575 = vperm.xlu1 %1261, %v94_v40   ;;  %v1322_v40 = vld [vmem:[#allocation7 + $0x14] ss:$8 sps:$4 sm:$0xff]  }
  0x40   :  { %570 = vperm.xlu0 %1260, %v93_v39   ;;  %v1317_v39 = vld [vmem:[#allocation7 + $0x20] ss:$8 sps:$4 sm:$0xff]  }
  0x41   :  { %275 = vmatpush1.bf16.msra.mxu0 %v1282_v14 }
  0x42   :  { %276 = vmatprep.subr.bf16.mxu0 %v1283_v15 }
  0x43   :  { %585 = vperm.xlu1 %1261, %v96_v44   ;;  %v1323_v44 = vld [vmem:[#allocation7] ss:$8 sps:$4 sm:$0xff]  }
  0x44   :  { %580 = vperm.xlu0 %1260, %v95_v43   ;;  %v1325_v43 = vld [vmem:[#allocation7 + $0x4] ss:$8 sps:$4 sm:$0xff]  }
  0x45   :  { %277 = vmatpush1.bf16.msra.mxu0 %v1285_v16 }
  0x47   :  { %595 = vperm.xlu1 %1261, %v98_v49  }
  0x48   :  { %295 = vmatmul.mubr.bf16.vlgmr.msra.gmra.mxu0 %v1286_v17  ;;  %590 = vperm.xlu0 %1260, %v97_v48  }
  0x49   :  { %304 = vmatprep.mubr.bf16.mxu0 %v1419_v0 }
  0x4b   :  { %605 = vperm.xlu1 %1261, %v100_v53  }
  0x4c   :  { %600 = vperm.xlu0 %1260, %v99_v52  }
  0x50   :  { %305 = vmatmul.mubr.bf16.gmra.mxu0 %v1287_v18 }
  0x51   :  { %314 = vmatprep.mubr.bf16.mxu0 %v1419_v0 }
  0x58   :  { %315 = vmatmul.mubr.bf16.gmra.mxu0 %v1288_v19  ;;  %v1304_v19 = vld [vmem:[#allocation7 + $0x74] ss:$8 sps:$4 sm:$0xff]  }
  0x59   :  { %324 = vmatprep.mubr.bf16.mxu0 %v1419_v0 }
  0x60   :  { %325 = vmatmul.mubr.bf16.gmra.mxu0 %v1289_v20  ;;  %v1614_v20 = vld [vmem:[#allocation2 + $0x8] sm:$0xff]  }
  0x61   :  { %334 = vmatprep.mubr.bf16.mxu0 %v1419_v0 }
  0x68   :  { %335 = vmatmul.mubr.bf16.gmra.mxu0 %v1290_v21  ;;  %v1617_v21 = vld [vmem:[#allocation2 + $0x10] sm:$0xff]  }
  0x69   :  { %344 = vmatprep.mubr.bf16.mxu0 %v1419_v0 }
  0x70   :  { %345 = vmatmul.mubr.bf16.gmra.mxu0 %v1291_v22  ;;  %v1302_v22 = vld [vmem:[#allocation7 + $0x70] ss:$8 sps:$4 sm:$0xff]  }
  0x71   :  { %354 = vmatprep.mubr.bf16.mxu0 %v1419_v0 }
  0x78   :  { %355 = vmatmul.mubr.bf16.gmra.mxu0 %v1292_v23  ;;  %v1307_v23 = vld [vmem:[#allocation7 + $0x64] ss:$8 sps:$4 sm:$0xff]  }
  0x79   :  { %364 = vmatprep.mubr.bf16.mxu0 %v1419_v0 }
  0x80   :  { %365 = vmatmul.mubr.bf16.gmra.mxu0 %v1293_v24  ;;  %v1305_v24 = vld [vmem:[#allocation7 + $0x60] ss:$8 sps:$4 sm:$0xff]  }
  0x81   :  { %1235 = vmatprep.mubr.bf16.mxu0 %v1294_v25  ;;  %v1310_v25 = vld [vmem:[#allocation7 + $0x54] ss:$8 sps:$4 sm:$0xff]  }
 0x108   :  { %v1549_v32 = vpop.f32.mrf.mxu0 }
 0x10a   :  { %v298_v33 = vpop.f32.mrf.mxu0 }
 0x10c   :  { %v1557_v36 = vpop.f32.mrf.mxu0 }
 0x10e   :  { %v302_v37 = vpop.f32.mrf.mxu0 }
 0x10f   :  { %v1559_v38 = vpack.c.bf16 %v302_v37, %v298_v33  ;;  %v1629_v33 = vld [vmem:[#allocation2 + $0x30] sm:$0xff]  }
 0x110   :  { %v1567_v41 = vpop.f32.mrf.mxu0  ;;  %v1314_v37 = vld [vmem:[#allocation7 + $0x30] ss:$8 sps:$4 sm:$0xff]  }
 0x112   :  { %v308_v42 = vpop.f32.mrf.mxu0 }
 0x114   :  { %v1575_v45 = vpop.f32.mrf.mxu0 }
 0x116   :  { %v312_v46 = vpop.f32.mrf.mxu0 }
 0x117   :  { %v376_v47 = vpack.c.bf16 %v312_v46, %v308_v42  ;;  %v1320_v42 = vld [vmem:[#allocation7 + $0x10] ss:$8 sps:$4 sm:$0xff]   ;;  %v1637_v46 = vpop.permute.xlu0 %530 }
 0x118   :  { %v1583_v50 = vpop.f32.mrf.mxu0 }
 0x11a   :  { %v318_v51 = vpop.f32.mrf.mxu0 }
 0x11b   :  { %v1642_v53 = vpop.permute.xlu0 %535 }
 0x11c   :  { %v1591_v54 = vpop.f32.mrf.mxu0 }
 0x11e   :  { %v322_v55 = vpop.f32.mrf.mxu0 }
 0x11f   :  { %v377_v18 = vpack.c.bf16 %v322_v55, %v318_v51 }
 0x120   :  { %v1593_v56 = vpop.f32.mrf.mxu0 }
 0x122   :  { %v328_v57 = vpop.f32.mrf.mxu0 }
 0x124   :  { %v1595_v58 = vpop.f32.mrf.mxu0 }
 0x126   :  { %v332_v59 = vpop.f32.mrf.mxu0 }
 0x127   :  { %v378_v17 = vpack.c.bf16 %v332_v59, %v328_v57 }
 0x128   :  { %v1597_v60 = vpop.f32.mrf.mxu0 }
 0x12a   :  { %v338_v61 = vpop.f32.mrf.mxu0 }
 0x12c   :  { %v1599_v62 = vpop.f32.mrf.mxu0 }
 0x12e   :  { %v342_v63 = vpop.f32.mrf.mxu0 }
 0x12f   :  { %v379_v16 = vpack.c.bf16 %v342_v63, %v338_v61 }
 0x130   :  { %v1601_v1 = vpop.f32.mrf.mxu0 }
 0x132   :  { %v348_v2 = vpop.f32.mrf.mxu0 }
 0x134   :  { %v1603_v3 = vpop.f32.mrf.mxu0 }
 0x136   :  { %v352_v4 = vpop.f32.mrf.mxu0 }
 0x137   :  { %v380_v15 = vpack.c.bf16 %v352_v4, %v348_v2  ;;  %v1652_v2 = vld [vmem:[%s1828_s4] ss:$0 sm:$0xff] }
 0x138   :  { %v1605_v5 = vpop.f32.mrf.mxu0 }
 0x13a   :  { %v358_v6 = vpop.f32.mrf.mxu0 }
 0x13c   :  { %v1607_v7 = vpop.f32.mrf.mxu0 }
 0x13e   :  { %v362_v8 = vpop.f32.mrf.mxu0 }
 0x13f   :  { %v381_v14 = vpack.c.bf16 %v362_v8, %v358_v6 }
 0x140   :  { %v1609_v9 = vpop.f32.mrf.mxu0 }
 0x142   :  { %v368_v10 = vpop.f32.mrf.mxu0 }
 0x144   :  { %v1611_v11 = vpop.f32.mrf.mxu0 }
 0x146   :  { %v372_v12 = vpop.f32.mrf.mxu0 }
 0x147   :  { %v382_v13 = vpack.c.bf16 %v372_v12, %v368_v10 }
 0x149   :  { %1187 = vmatprep.subr.bf16.mxu1 %v382_v13 }
 0x14a   :  { %1188 = vmatpush3.bf16.msra.mxu1 %v382_v13 }
 0x14b   :  { %1189 = vmatprep.subr.bf16.mxu1 %v381_v14 }
 0x14e   :  { %1190 = vmatpush3.bf16.msra.mxu1 %v381_v14 }
 0x14f   :  { %1191 = vmatprep.subr.bf16.mxu1 %v380_v15 }
 0x152   :  { %1192 = vmatpush3.bf16.msra.mxu1 %v380_v15 }
 0x153   :  { %1193 = vmatprep.subr.bf16.mxu1 %v379_v16 }
 0x156   :  { %1194 = vmatpush3.bf16.msra.mxu1 %v379_v16 }
 0x157   :  { %1195 = vmatprep.subr.bf16.mxu1 %v378_v17 }
 0x15a   :  { %1196 = vmatpush3.bf16.msra.mxu1 %v378_v17 }
 0x15b   :  { %1197 = vmatprep.subr.bf16.mxu1 %v377_v18 }
 0x15e   :  { %1198 = vmatpush3.bf16.msra.mxu1 %v377_v18 }
 0x15f   :  { %1199 = vmatprep.subr.bf16.mxu1 %v376_v47 }
 0x162   :  { %1200 = vmatpush3.bf16.msra.mxu1 %v376_v47  ;;  %v1639_v47 = vpop.permute.xlu1 %540 }
 0x163   :  { %1201 = vmatprep.subr.bf16.mxu1 %v1559_v38 }
 0x166   :  { %1202 = vmatpush3.bf16.msra.mxu1 %v1559_v38  ;;  %v1319_v38 = vld [vmem:[#allocation7 + $0x24] ss:$8 sps:$4 sm:$0xff]   ;;  %v1645_v57 = vpop.permute.xlu1 %545 }
 0x167   :  { %783 = vmatprep.subr.bf16.mxu1 %v1304_v19 }
 0x169   :  { %1204 = vmatmul.mubr.bf16.vlgmr.msra.gmra.mxu1 %v1614_v20 }
 0x16a   :  { %1207 = vmatprep.mubr.bf16.mxu1 %v1617_v21  ;;  %784 = vmatpush1.bf16.msra.mxu1 %v1302_v22  ;;  %v1660_v19 = vpop.permute.xlu1 %555 }
 0x16b   :  { %785 = vmatprep.subr.bf16.mxu1 %v1307_v23 }
 0x16e   :  { %786 = vmatpush1.bf16.msra.mxu1 %v1305_v24  ;;  %v1663_v24 = vpop.permute.xlu0 %550 }
 0x16f   :  { %787 = vmatprep.subr.bf16.mxu1 %v1310_v25 }
 0x171   :  { %1208 = vmatmul.mubr.bf16.gmra.mxu1 %v1621_v26 }
 0x172   :  { %1211 = vmatprep.mubr.bf16.mxu1 %v1623_v27  ;;  %788 = vmatpush1.bf16.msra.mxu1 %v1308_v28 }
 0x173   :  { %789 = vmatprep.subr.bf16.mxu1 %v1313_v29 }
 0x176   :  { %790 = vmatpush1.bf16.msra.mxu1 %v1311_v30 }
 0x177   :  { %791 = vmatprep.subr.bf16.mxu1 %v1316_v35 }
 0x179   :  { %1212 = vmatmul.mubr.bf16.gmra.mxu1 %v1627_v31 }
 0x17a   :  { %1215 = vmatprep.mubr.bf16.mxu1 %v1629_v33  ;;  %792 = vmatpush1.bf16.msra.mxu1 %v1314_v37 }
 0x17b   :  { %793 = vmatprep.subr.bf16.mxu1 %v1319_v38  ;;  %v1671_v38 = vpop.permute.xlu1 %565 }
 0x17e   :  { %794 = vmatpush1.bf16.msra.mxu1 %v1317_v39 }
 0x17f   :  { %795 = vmatprep.subr.bf16.mxu1 %v1322_v40 }
 0x181   :  { %1216 = vmatmul.mubr.bf16.gmra.mxu1 %v1633_v34 }
 0x182   :  { %815 = vmatprep.mubr.bf16.mxu1 %v1419_v0  ;;  %796 = vmatpush1.bf16.msra.mxu1 %v1320_v42 }
 0x183   :  { %797 = vmatprep.subr.bf16.mxu1 %v1325_v43  ;;  %v1675_v43 = vpop.permute.xlu0 %560 }
 0x186   :  { %798 = vmatpush1.bf16.msra.mxu1 %v1323_v44 }
 0x229   :  { %v1205_v48 = vpop.f32.mrf.mxu1 }
 0x22a   :  { %v610_v6 = vmul.f32 %v1205_v48, %v1639_v47 }
 0x22b   :  { %v465_v49 = vpop.f32.mrf.mxu1 }
 0x22c   :  { %v608_v51 = vmul.f32 %v1637_v46, %v465_v49  ;;  %v626_v15 = vadd.f32 %v610_v6, %v1567_v41 }
 0x22d   :  { %v1206_v52 = vpop.f32.mrf.mxu1 }
 0x22e   :  { %v624_v55 = vadd.f32 %v608_v51, %v1549_v32  ;;  %v611_v61 = vmul.f32 %v1206_v52, %v1645_v57 }
 0x22f   :  { %v468_v59 = vpop.f32.mrf.mxu1 }
 0x230   :  { %v609_v63 = vmul.f32 %v1642_v53, %v468_v59  ;;  %v646_v8 = vadd.f32 %v1652_v2, %v624_v55  ;;  %v627_v12 = vadd.f32 %v611_v61, %v1575_v45  ;;  %v648_v45 = vadd.f32 %v1652_v2, %v626_v15  ;;  %v1682_v59 = vpop.permute.xlu1 %575 }
 0x231   :  { %v1209_v4 = vpop.f32.mrf.mxu1 }
 0x232   :  { %v625_v10 = vadd.f32 %v609_v63, %v1557_v36  ;;  %v662_v16 = vmax.f32 %v646_v8, 0.0  ;;  %v649_v22 = vadd.f32 %v1652_v2, %v627_v12  ;;  %v664_v35 = vmax.f32 %v648_v45, 0.0 }
 0x233   :  { %v481_v32 = vpop.f32.mrf.mxu1  ;;  %v614_v48 = vmul.f32 %v1209_v4, %v1675_v43  ;;  %v1686_v4 = vpop.permute.xlu0 %570 }
 0x234   :  { %v647_v13 = vadd.f32 %v1652_v2, %v625_v10  ;;  %v612_v28 = vmul.f32 %v1663_v24, %v481_v32  ;;  %v665_v41 = vmax.f32 %v649_v22, 0.0  ;;  %v1693_v15 = vpop.permute.xlu1 %585 }
 0x235   :  { %v1210_v14 = vpop.f32.mrf.mxu1  ;;  %v630_v52 = vadd.f32 %v614_v48, %v1593_v56 }
 0x236   :  { %v663_v17 = vmax.f32 %v647_v13, 0.0  ;;  %v628_v37 = vadd.f32 %v612_v28, %v1583_v50  ;;  %v615_v39 = vmul.f32 %v1210_v14, %v1671_v38  ;;  %v679_v42 = vpack.c.bf16 %v665_v41, %v664_v35 }
 0x237   :  { %v484_v18 = vpop.f32.mrf.mxu1  ;;  %v652_v10 = vadd.f32 %v1652_v2, %v630_v52  ;;  %v1697_v22 = vpop.permute.xlu0 %580 }
 0x238   :  { %v678_v23 = vpack.c.bf16 %v663_v17, %v662_v16  ;;  %v613_v36 = vmul.f32 %v1660_v19, %v484_v18  ;;  %v650_v49 = vadd.f32 %v1652_v2, %v628_v37 }
 0x239   :  { %v1213_v25 = vpop.f32.mrf.mxu1  ;;  %v668_v13 = vmax.f32 %v652_v10, 0.0 }
 0x23a   :  { %816 = vmatmul.mubr.bf16.vlgmr.msra.gmra.mxu1 %v678_v23  ;;  %v629_v29 = vadd.f32 %v613_v36, %v1591_v54  ;;  %v631_v54 = vadd.f32 %v615_v39, %v1595_v58  ;;  %v666_v55 = vmax.f32 %v650_v49, 0.0  ;;  %v618_v36 = vmul.f32 %v1213_v25, %v1697_v22 }
 0x23b   :  { %825 = vmatprep.mubr.bf16.mxu1 %v1419_v0  ;;  %v497_v30 = vpop.f32.mrf.mxu1  ;;  %v1708_v25 = vpop.permute.xlu0 %590 }
 0x23c   :  { %v651_v40 = vadd.f32 %v1652_v2, %v629_v29  ;;  %v653_v61 = vadd.f32 %v1652_v2, %v631_v54  ;;  %v616_v32 = vmul.f32 %v1686_v4, %v497_v30  ;;  %v634_v41 = vadd.f32 %v618_v36, %v1601_v1  ;;  %v1704_v30 = vpop.permute.xlu1 %595 }
 0x23d   :  { %v1214_v44 = vpop.f32.mrf.mxu1 }
 0x23e   :  { %v667_v50 = vmax.f32 %v651_v40, 0.0  ;;  %v669_v58 = vmax.f32 %v653_v61, 0.0  ;;  %v632_v14 = vadd.f32 %v616_v32, %v1597_v60  ;;  %v619_v16 = vmul.f32 %v1214_v44, %v1693_v15 }
 0x23f   :  { %v500_v51 = vpop.f32.mrf.mxu1  ;;  %v656_v40 = vadd.f32 %v1652_v2, %v634_v41  ;;  %v1719_v52 = vpop.permute.xlu0 %600 }
 0x240   :  { %v617_v63 = vmul.f32 %v1682_v59, %v500_v51  ;;  %v680_v6 = vpack.c.bf16 %v667_v50, %v666_v55  ;;  %v681_v18 = vpack.c.bf16 %v669_v58, %v668_v13  ;;  %v654_v45 = vadd.f32 %v1652_v2, %v632_v14  ;;  %v1715_v49 = vpop.permute.xlu1 %605 }
 0x241   :  { %v1217_v8 = vpop.f32.mrf.mxu1  ;;  %v672_v44 = vmax.f32 %v656_v40, 0.0 }
 0x242   :  { %826 = vmatmul.mubr.bf16.gmra.mxu1 %v679_v42  ;;  %v633_v56 = vadd.f32 %v617_v63, %v1599_v62  ;;  %v635_v62 = vadd.f32 %v619_v16, %v1603_v3  ;;  %v670_v29 = vmax.f32 %v654_v45, 0.0  ;;  %v622_v55 = vmul.f32 %v1217_v8, %v1719_v52 }
 0x243   :  { %835 = vmatprep.mubr.bf16.mxu1 %v1419_v0  ;;  %v513_v12 = vpop.f32.mrf.mxu1 }
 0x244   :  { %v655_v17 = vadd.f32 %v1652_v2, %v633_v56  ;;  %v657_v35 = vadd.f32 %v1652_v2, %v635_v62  ;;  %v620_v42 = vmul.f32 %v1708_v25, %v513_v12 }
 0x245   :  { %v1218_v23 = vpop.f32.mrf.mxu1 }
 0x246   :  { %v671_v60 = vmax.f32 %v655_v17, 0.0  ;;  %v673_v3 = vmax.f32 %v657_v35, 0.0  ;;  %v636_v48 = vadd.f32 %v620_v42, %v1605_v5  ;;  %v623_v54 = vmul.f32 %v1218_v23, %v1715_v49 }
 0x247   :  { %v516_v28 = vpop.f32.mrf.mxu1  ;;  %v638_v5 = vadd.f32 %v622_v55, %v1609_v9 }
 0x248   :  { %v621_v37 = vmul.f32 %v1704_v30, %v516_v28  ;;  %v682_v39 = vpack.c.bf16 %v671_v60, %v670_v29  ;;  %v683_v51 = vpack.c.bf16 %v673_v3, %v672_v44  ;;  %v658_v61 = vadd.f32 %v1652_v2, %v636_v48 }
 0x249   :  { %v660_v58 = vadd.f32 %v1652_v2, %v638_v5 }
 0x24a   :  { %836 = vmatmul.mubr.bf16.gmra.mxu1 %v680_v6  ;;  %v637_v1 = vadd.f32 %v621_v37, %v1607_v7  ;;  %v639_v7 = vadd.f32 %v623_v54, %v1611_v11  ;;  %v674_v6 = vmax.f32 %v658_v61, 0.0 }
 0x24b   :  { %845 = vmatprep.mubr.bf16.mxu1 %v1419_v0  ;;  %v676_v56 = vmax.f32 %v660_v58, 0.0 }
 0x24c   :  { %v659_v50 = vadd.f32 %v1652_v2, %v637_v1  ;;  %v661_v10 = vadd.f32 %v1652_v2, %v639_v7 }
 0x24e   :  { %v675_v63 = vmax.f32 %v659_v50, 0.0  ;;  %v677_v8 = vmax.f32 %v661_v10, 0.0 }
 0x250   :  { %v684_v32 = vpack.c.bf16 %v675_v63, %v674_v6  ;;  %v685_v12 = vpack.c.bf16 %v677_v8, %v676_v56 }
 0x252   :  { %846 = vmatmul.mubr.bf16.gmra.mxu1 %v681_v18 }
 0x253   :  { %855 = vmatprep.mubr.bf16.mxu1 %v1419_v0 }
 0x25a   :  { %856 = vmatmul.mubr.bf16.gmra.mxu1 %v682_v39 }
 0x25b   :  { %865 = vmatprep.mubr.bf16.mxu1 %v1419_v0 }
 0x262   :  { %866 = vmatmul.mubr.bf16.gmra.mxu1 %v683_v51 }
 0x263   :  { %875 = vmatprep.mubr.bf16.mxu1 %v1419_v0 }
 0x26a   :  { %876 = vmatmul.mubr.bf16.gmra.mxu1 %v684_v32 }
 0x26b   :  { %885 = vmatprep.mubr.bf16.mxu1 %v1419_v0 }
 0x272   :  { %886 = vmatmul.mubr.bf16.gmra.mxu1 %v685_v12 }
 0x2fa   :  { %v1729_v13 = vpop.f32.mrf.mxu1 }
 0x2fc   :  { %v819_v14 = vpop.f32.mrf.mxu1 }
 0x2fe   :  { %v1731_v11 = vpop.f32.mrf.mxu1 }
 0x300   :  { %v823_v16 = vpop.f32.mrf.mxu1 }
 0x301   :  { %v896_v9 = vpack.c.bf16 %v823_v16, %v819_v14  ;;  %v1770_v16 = vld [vmem:[%s1830_s6] ss:$0 sm:$0xff]  ;;  %s1420_s6 = smov [#allocation8]  }
 0x302   :  { %v827_v17 = vpop.f32.mrf.mxu1  ;;  %s1092_s10 = sshll.u32 %s1420_s6, 4  ;;  %s1093_s10 = int_to_ptr.vmem [resolvable:$true] %s1092_s10 }
 0x303   :  { %s1386_s11 = scalar_lea.vmem %s1093_s10, 2048  ;;  %p1391_p2 = scmp.lt.s32.totalorder %s1093_s10, %s1093_s10 }
 0x304   :  { %v829_v18 = vpop.f32.mrf.mxu1  ;;  %p1387_p1 = scmp.ne.s32.totalorder %s1093_s10, %s1386_s11  ;;  %p1392_p3 = scmp.lt.s32.totalorder %s1386_s11, %s1386_s11 }
 0x306   :  { %v1733_v23 = vpop.f32.mrf.mxu1  ;;  %p1393_p4 = por %p1392_p3, %p1391_p2 }
 0x308   :  { %v833_v36 = vpop.f32.mrf.mxu1  ;;  %p1394_p5 = pnand %p1393_p4, %p1387_p1 }
 0x309   :  { %v897_v2 = vpack.c.bf16 %v833_v36, %v829_v18 }
 0x30a   :  { %v1735_v45 = vpop.f32.mrf.mxu1 }
 0x30c   :  { %v839_v0 = vpop.f32.mrf.mxu1 }
 0x30e   :  { %v1737_v62 = vpop.f32.mrf.mxu1 }
 0x310   :  { %v843_v60 = vpop.f32.mrf.mxu1 }
 0x311   :  { %v898_v56 = vpack.c.bf16 %v843_v60, %v839_v0 }
 0x312   :  { %v1739_v28 = vpop.f32.mrf.mxu1 }
 0x314   :  { %v849_v41 = vpop.f32.mrf.mxu1 }
 0x316   :  { %v1741_v29 = vpop.f32.mrf.mxu1 }
 0x318   :  { %v853_v35 = vpop.f32.mrf.mxu1 }
 0x319   :  { %v899_v8 = vpack.c.bf16 %v853_v35, %v849_v41 }
 0x31a   :  { %v1743_v37 = vpop.f32.mrf.mxu1 }
 0x31c   :  { %v859_v39 = vpop.f32.mrf.mxu1 }
 0x31e   :  { %v1745_v40 = vpop.f32.mrf.mxu1 }
 0x320   :  { %v863_v42 = vpop.f32.mrf.mxu1 }
 0x321   :  { %v900_v58 = vpack.c.bf16 %v863_v42, %v859_v39 }
 0x322   :  { %v1747_v3 = vpop.f32.mrf.mxu1 }
 0x324   :  { %v869_v1 = vpop.f32.mrf.mxu1 }
 0x326   :  { %v1749_v44 = vpop.f32.mrf.mxu1 }
 0x328   :  { %v873_v48 = vpop.f32.mrf.mxu1 }
 0x329   :  { %v901_v32 = vpack.c.bf16 %v873_v48, %v869_v1 }
 0x32a   :  { %v1751_v54 = vpop.f32.mrf.mxu1 }
 0x32c   :  { %v879_v50 = vpop.f32.mrf.mxu1 }
 0x32e   :  { %v1753_v51 = vpop.f32.mrf.mxu1 }
 0x330   :  { %v883_v55 = vpop.f32.mrf.mxu1 }
 0x331   :  { %v902_v10 = vpack.c.bf16 %v883_v55, %v879_v50 }
 0x332   :  { %v1755_v61 = vpop.f32.mrf.mxu1 }
 0x334   :  { %v889_v7 = vpop.f32.mrf.mxu1 }
 0x336   :  { %v1757_v63 = vpop.f32.mrf.mxu1 }
 0x338   :  { %v893_v5 = vpop.f32.mrf.mxu1 }
 0x339   :  { %v903_v6 = vpack.c.bf16 %v893_v5, %v889_v7 }
 0x33b   :  { %1219 = vmatprep.subr.bf16.mxu0 %v903_v6 }
 0x33c   :  { %1220 = vmatpush3.bf16.msra.mxu0 %v903_v6 }
 0x33d   :  { %1221 = vmatprep.subr.bf16.mxu0 %v902_v10 }
 0x340   :  { %1222 = vmatpush3.bf16.msra.mxu0 %v902_v10 }
 0x341   :  { %1223 = vmatprep.subr.bf16.mxu0 %v901_v32 }
 0x344   :  { %1224 = vmatpush3.bf16.msra.mxu0 %v901_v32 }
 0x345   :  { %1225 = vmatprep.subr.bf16.mxu0 %v900_v58 }
 0x348   :  { %1226 = vmatpush3.bf16.msra.mxu0 %v900_v58 }
 0x349   :  { %1227 = vmatprep.subr.bf16.mxu0 %v899_v8 }
 0x34c   :  { %1228 = vmatpush3.bf16.msra.mxu0 %v899_v8 }
 0x34d   :  { %1229 = vmatprep.subr.bf16.mxu0 %v898_v56 }
 0x350   :  { %1230 = vmatpush3.bf16.msra.mxu0 %v898_v56 }
 0x351   :  { %1231 = vmatprep.subr.bf16.mxu0 %v897_v2 }
 0x354   :  { %1232 = vmatpush3.bf16.msra.mxu0 %v897_v2 }
 0x355   :  { %1233 = vmatprep.subr.bf16.mxu0 %v896_v9 }
 0x358   :  { %1234 = vmatpush3.bf16.msra.mxu0 %v896_v9 }
 0x35b   :  { %1236 = vmatmul.mubr.bf16.vlgmr.msra.gmra.mxu0 %v1614_v20 }
 0x35c   :  { %1239 = vmatprep.mubr.bf16.mxu0 %v1617_v21 }
 0x363   :  { %1240 = vmatmul.mubr.bf16.gmra.mxu0 %v1621_v26 }
 0x364   :  { %1243 = vmatprep.mubr.bf16.mxu0 %v1623_v27 }
 0x36b   :  { %1244 = vmatmul.mubr.bf16.gmra.mxu0 %v1627_v31 }
 0x36c   :  { %1247 = vmatprep.mubr.bf16.mxu0 %v1629_v33 }
 0x373   :  { %1248 = vmatmul.mubr.bf16.gmra.mxu0 %v1633_v34 }
 0x41b   :  { %v1237_v12 = vpop.f32.mrf.mxu0 }
 0x41c   :  { %v1003_v14 = vmul.f32 %v1237_v12, %v1639_v47 }
 0x41d   :  { %v938_v20 = vpop.f32.mrf.mxu0 }
 0x41e   :  { %v1019_v21 = vadd.f32 %v1003_v14, %v827_v17  ;;  %v1001_v26 = vmul.f32 %v938_v20, %v1637_v46 }
 0x41f   :  { %v1238_v9 = vpop.f32.mrf.mxu0 }
 0x420   :  { %v1041_v27 = vadd.f32 %v1770_v16, %v1019_v21  ;;  %v1017_v31 = vadd.f32 %v1001_v26, %v1729_v13  ;;  %v1004_v33 = vmul.f32 %v1238_v9, %v1645_v57 }
 0x421   :  { %v941_v34 = vpop.f32.mrf.mxu0 }
 0x422   :  { %v1057_v18 = vmax.f32 %v1041_v27, 0.0  ;;  %v1039_v47 = vadd.f32 %v1770_v16, %v1017_v31  ;;  %v1020_v36 = vadd.f32 %v1004_v33, %v1733_v23  ;;  %v1002_v2 = vmul.f32 %v941_v34, %v1642_v53 }
 0x423   :  { %v1241_v0 = vpop.f32.mrf.mxu0 }
 0x424   :  { %1073 = vst [vmem:[#allocation8 + $0x10] sm:$0xff] %v1057_v18  ;;  %v1055_v17 = vmax.f32 %v1039_v47, 0.0  ;;  %v1042_v46 = vadd.f32 %v1770_v16, %v1020_v36  ;;  %v1018_v60 = vadd.f32 %v1002_v2, %v1731_v11  ;;  %v1007_v41 = vmul.f32 %v1241_v0, %v1675_v43 }
 0x425   :  { %v954_v13 = vpop.f32.mrf.mxu0 }
 0x426   :  { %1071 = vst [vmem:[#allocation8] sm:$0xff] %v1055_v17  ;;  %v1058_v57 = vmax.f32 %v1042_v46, 0.0  ;;  %v1040_v35 = vadd.f32 %v1770_v16, %v1018_v60  ;;  %v1023_v39 = vadd.f32 %v1007_v41, %v1739_v28  ;;  %v1005_v23 = vmul.f32 %v954_v13, %v1663_v24 }
 0x427   :  { %v1242_v42 = vpop.f32.mrf.mxu0 }
 0x428   :  { %1074 = vst [vmem:[#allocation8 + $0x18] sm:$0xff] %v1058_v57  ;;  %v1056_v53 = vmax.f32 %v1040_v35, 0.0  ;;  %v1045_v1 = vadd.f32 %v1770_v16, %v1023_v39  ;;  %v1021_v48 = vadd.f32 %v1005_v23, %v1735_v45  ;;  %v1008_v11 = vmul.f32 %v1242_v42, %v1671_v38 }
 0x429   :  { %v957_v50 = vpop.f32.mrf.mxu0 }
 0x42a   :  { %1072 = vst [vmem:[#allocation8 + $0x8] sm:$0xff] %v1056_v53  ;;  %v1061_v43 = vmax.f32 %v1045_v1, 0.0  ;;  %v1043_v55 = vadd.f32 %v1770_v16, %v1021_v48  ;;  %v1024_v7 = vadd.f32 %v1008_v11, %v1741_v29  ;;  %v1006_v28 = vmul.f32 %v957_v50, %v1660_v19 }
 0x42b   :  { %v1245_v5 = vpop.f32.mrf.mxu0 }
 0x42c   :  { %1077 = vst [vmem:[#allocation8 + $0x30] sm:$0xff] %v1061_v43  ;;  %v1059_v24 = vmax.f32 %v1043_v55, 0.0  ;;  %v1046_v6 = vadd.f32 %v1770_v16, %v1024_v7  ;;  %v1022_v10 = vadd.f32 %v1006_v28, %v1737_v62  ;;  %v1011_v45 = vmul.f32 %v1245_v5, %v1697_v22 }
 0x42d   :  { %v970_v32 = vpop.f32.mrf.mxu0 }
 0x42e   :  { %1075 = vst [vmem:[#allocation8 + $0x20] sm:$0xff] %v1059_v24  ;;  %v1062_v38 = vmax.f32 %v1046_v6, 0.0  ;;  %v1044_v58 = vadd.f32 %v1770_v16, %v1022_v10  ;;  %v1027_v8 = vadd.f32 %v1011_v45, %v1747_v3  ;;  %v1009_v29 = vmul.f32 %v970_v32, %v1686_v4 }
 0x42f   :  { %v1246_v56 = vpop.f32.mrf.mxu0 }
 0x430   :  { %1078 = vst [vmem:[#allocation8 + $0x38] sm:$0xff] %v1062_v38  ;;  %v1060_v19 = vmax.f32 %v1044_v58, 0.0  ;;  %v1049_v12 = vadd.f32 %v1770_v16, %v1027_v8  ;;  %v1025_v14 = vadd.f32 %v1009_v29, %v1743_v37  ;;  %v1012_v62 = vmul.f32 %v1246_v56, %v1693_v15 }
 0x431   :  { %v973_v20 = vpop.f32.mrf.mxu0 }
 0x432   :  { %1076 = vst [vmem:[#allocation8 + $0x28] sm:$0xff] %v1060_v19  ;;  %v1065_v22 = vmax.f32 %v1049_v12, 0.0  ;;  %v1047_v21 = vadd.f32 %v1770_v16, %v1025_v14  ;;  %v1028_v26 = vadd.f32 %v1012_v62, %v1749_v44  ;;  %v1010_v3 = vmul.f32 %v973_v20, %v1682_v59 }
 0x433   :  { %v1249_v9 = vpop.f32.mrf.mxu0 }
 0x434   :  { %1081 = vst [vmem:[#allocation8 + $0x50] sm:$0xff] %v1065_v22  ;;  %v1063_v4 = vmax.f32 %v1047_v21, 0.0  ;;  %v1050_v27 = vadd.f32 %v1770_v16, %v1028_v26  ;;  %v1026_v31 = vadd.f32 %v1010_v3, %v1745_v40  ;;  %v1015_v37 = vmul.f32 %v1249_v9, %v1719_v52 }
 0x435   :  { %v986_v33 = vpop.f32.mrf.mxu0 }
 0x436   :  { %1079 = vst [vmem:[#allocation8 + $0x40] sm:$0xff] %v1063_v4  ;;  %v1066_v15 = vmax.f32 %v1050_v27, 0.0  ;;  %v1048_v34 = vadd.f32 %v1770_v16, %v1026_v31  ;;  %v1031_v18 = vadd.f32 %v1015_v37, %v1755_v61  ;;  %v1013_v44 = vmul.f32 %v986_v33, %v1708_v25 }
 0x437   :  { %v1250_v47 = vpop.f32.mrf.mxu0 }
 0x438   :  { %1082 = vst [vmem:[#allocation8 + $0x58] sm:$0xff] %v1066_v15  ;;  %v1064_v59 = vmax.f32 %v1048_v34, 0.0  ;;  %v1053_v36 = vadd.f32 %v1770_v16, %v1031_v18  ;;  %v1029_v2 = vadd.f32 %v1013_v44, %v1751_v54  ;;  %v1016_v40 = vmul.f32 %v1250_v47, %v1715_v49 }
 0x439   :  { %v989_v0 = vpop.f32.mrf.mxu0 }
 0x43a   :  { %1080 = vst [vmem:[#allocation8 + $0x48] sm:$0xff] %v1064_v59  ;;  %v1069_v52 = vmax.f32 %v1053_v36, 0.0  ;;  %v1051_v17 = vadd.f32 %v1770_v16, %v1029_v2  ;;  %v1032_v46 = vadd.f32 %v1016_v40, %v1757_v63  ;;  %v1014_v61 = vmul.f32 %v989_v0, %v1704_v30 }
 0x43c   :  { %1085 = vst [vmem:[#allocation8 + $0x70] sm:$0xff] %v1069_v52  ;;  %v1067_v25 = vmax.f32 %v1051_v17, 0.0  ;;  %v1054_v60 = vadd.f32 %v1770_v16, %v1032_v46  ;;  %v1030_v41 = vadd.f32 %v1014_v61, %v1753_v51 }
 0x43e   :  { %1083 = vst [vmem:[#allocation8 + $0x60] sm:$0xff] %v1067_v25  ;;  %v1070_v54 = vmax.f32 %v1054_v60, 0.0  ;;  %v1052_v49 = vadd.f32 %v1770_v16, %v1030_v41 }
 0x440   :  { %1086 = vst [vmem:[#allocation8 + $0x78] sm:$0xff] %v1070_v54  ;;  %v1068_v13 = vmax.f32 %v1052_v49, 0.0 }
 0x442   :  { %1084 = vst [vmem:[#allocation8 + $0x68] sm:$0xff] %v1068_v13 }
 0x443   :  { %1397 = shalt.err (!%p1394_p5)
}
 0x444   :  { %1098 = dma.vmem_to_hbm [thread:$0]  %s1093_s10, 2048, %s1831_s7, [#allocation4], %s1417_s2, %s1417_s2, %s1418_s16  }
 0x445   :  { %1410 = dma.done.wait [#allocation4], 2048  }
 0x446   :  { %1411 = vsyncadd [#allocation4], 4294965248 }
 0x447   :  { %1102 = vsyncpa [#allocation3], 1 }
 0x448   :  { %1103 = vsyncpa [#allocation6], 1 }
 0x449   :  { %1104 = vsyncpa [#allocation4], 1 }

</bundles_post_ra>
